<compile_context>
chip_gen: v7x
topology: tpu7x:2x2x1
jax: 0.10.0
libtpu: 0.0.40
codegen_flags: <defaults>
</compile_context>

<pallas_src>
import jax
import jax.numpy as jnp
from jax import lax
from jax.experimental import pallas as pl
from jax.experimental.pallas import tpu as pltpu

KS = 7
PAD = KS // 2


def _vmem_capacity_bytes():
    """Best-effort physical VMEM size (fallback: 128 MiB, v5e/v6e)."""
    try:
        info = pltpu.get_tpu_info()
        cap = getattr(info, "vmem_capacity_bytes", None)
        if cap:
            return int(cap)
    except Exception:
        pass
    return 128 * 1024 * 1024


def _pick_c_block(C, HW, itemsize, budget_bytes):
    """Largest channel chunk whose double-buffered slab fits the budget.

    Block-shape rule: the second-to-last block dim must be a multiple of 8 or
    equal the full extent C, so when chunking we round down to a multiple of 8.
    """
    per_row = max(1, HW * itemsize)
    c_blk = max(1, budget_bytes // (2 * per_row))   # 2x: double buffering
    if c_blk >= C:
        return C
    c_blk = max(8, (c_blk // 8) * 8)
    return min(c_blk, C)


def spatial_attention(x, weight, bias):
    """x: (B, C, H, W); weight: (1, 2, KS, KS); bias: (1,). Returns (B, 1, H, W)."""
    B, C, H, W = x.shape
    HW = H * W
    Hp, Wp = H + 2 * PAD, W + 2 * PAD

    cap = _vmem_capacity_bytes()
    budget = max(2 << 20, cap // 8)                 # per-buffer x slab budget
    c_blk = _pick_c_block(C, HW, x.dtype.itemsize, budget)
    n_cc = pl.cdiv(C, c_blk)
    has_tail = (C % c_blk) != 0
    vmem_limit = int(min(64 << 20, max(32 << 20, cap // 2)))

    # ------------- kernel 1: lane-dense channel max + sum (streaming) -------------
    def reduce_kernel(x_ref, o_ref):
        # x_ref: (c_blk, HW) in x.dtype; o_ref: (2, HW) f32, resident across cc.
        cc = pl.program_id(1)
        xb = x_ref[...].astype(jnp.float32)
        if has_tail:
            ch = cc * c_blk + lax.broadcasted_iota(jnp.int32, xb.shape, 0)
            valid = ch < C
            x_mx = jnp.where(valid, xb, -jnp.inf)
            x_sm = jnp.where(valid, xb, 0.0)
        else:
            x_mx = x_sm = xb
        mx_c = jnp.max(x_mx, axis=0)
        sm_c = jnp.sum(x_sm, axis=0)

        # Accumulate into the resident output block (matmul-style pattern).
        # NOTE: relies on cc being the innermost, sequential ("arbitrary") axis.
        @pl.when(cc == 0)
        def _():
            o_ref[0, :] = jnp.full((HW,), -jnp.inf, dtype=jnp.float32)
            o_ref[1, :] = jnp.zeros((HW,), dtype=jnp.float32)

        o_ref[0, :] = jnp.maximum(o_ref[0, :], mx_c)
        o_ref[1, :] = o_ref[1, :] + sm_c

    x_flat = x.reshape(B, C, HW)                    # free: NCHW is contiguous
    maps_flat = pl.pallas_call(
        reduce_kernel,
        out_shape=jax.ShapeDtypeStruct((B, 2, HW), jnp.float32),
        grid=(B, n_cc),
        in_specs=[pl.BlockSpec((None, c_blk, HW), lambda bi, ci: (bi, ci, 0))],
        out_specs=pl.BlockSpec((None, 2, HW), lambda bi, ci: (bi, 0, 0)),
        compiler_params=pltpu.CompilerParams(
            dimension_semantics=("parallel", "arbitrary"),
            vmem_limit_bytes=vmem_limit,
        ),
    )(x_flat)

    # ------------- kernel 2: 7x7 conv + bias + sigmoid on the 2-ch map -------------
    def conv_kernel(m_ref, w_ref, b_ref, o_ref, pad_ref, shifted_ref):
        # m_ref: (2, H, W) [max, sum]; w_ref: (2*KS*KS,) SMEM (avg taps * 1/C);
        # b_ref: (1,) SMEM; o_ref: (H, W);
        # pad_ref: (2, Hp, Wp) zero-padded maps; shifted_ref: (2*KS, Hp, W).
        pad_ref[...] = jnp.zeros_like(pad_ref)
        pad_ref[0, pl.ds(PAD, H), pl.ds(PAD, W)] = m_ref[0]
        pad_ref[1, pl.ds(PAD, H), pl.ds(PAD, W)] = m_ref[1]

        # 14 lane-shifted maps, built exactly once (static lane offsets).
        for c in range(2):
            for kj in range(KS):
                shifted_ref[c * KS + kj] = pad_ref[c, :, kj:kj + W]

        # Hoist the 98 scalar weight reads out of the tap loop, then fully
        # unroll the taps; the inner loads are sublane-offset only.
        ws = [w_ref[i] for i in range(2 * KS * KS)]
        acc = jnp.full((H, W), b_ref[0], dtype=jnp.float32)
        for ki in range(KS):
            for c in range(2):
                for kj in range(KS):
                    wgt = ws[c * KS * KS + ki * KS + kj]
                    acc = acc + wgt * shifted_ref[c * KS + kj, ki:ki + H, :]
        o_ref[...] = jax.nn.sigmoid(acc).astype(o_ref.dtype)

    # Fold the mean's 1/C into the avg-channel taps (kernel 1 only needs sums).
    w = weight.astype(jnp.float32)
    w = w.at[:, 1, :, :].multiply(1.0 / C)
    w_flat = w.reshape(-1)
    b_vec = bias.astype(jnp.float32).reshape(-1)

    maps_4d = maps_flat.reshape(B, 2, H, W)          # free reshape outside kernel

    out = pl.pallas_call(
        conv_kernel,
        out_shape=jax.ShapeDtypeStruct((B, 1, H, W), jnp.float32),
        grid=(B,),
        in_specs=[
            pl.BlockSpec((None, 2, H, W), lambda bi: (bi, 0, 0, 0)),
            pl.BlockSpec(memory_space=pltpu.MemorySpace.SMEM),
            pl.BlockSpec(memory_space=pltpu.MemorySpace.SMEM),
        ],
        out_specs=pl.BlockSpec((None, None, H, W), lambda bi: (bi, 0, 0, 0)),
        scratch_shapes=[
            pltpu.VMEM((2, Hp, Wp), jnp.float32),      # zero-padded [max, sum]
            pltpu.VMEM((2 * KS, Hp, W), jnp.float32),  # lane-shifted maps
        ],
        compiler_params=pltpu.CompilerParams(
            dimension_semantics=("parallel",),
            vmem_limit_bytes=min(48 << 20, vmem_limit),
        ),
    )(maps_4d, w_flat, b_vec)
    return out


def reference(x, weight, bias):
    """Pure-JAX reference matching the PyTorch module."""
    max_r = jnp.max(x, axis=1, keepdims=True)
    avg_r = jnp.mean(x, axis=1, keepdims=True)
    cat = jnp.concatenate([max_r, avg_r], axis=1)
    out = lax.conv_general_dilated(
        cat, weight, window_strides=(1, 1),
        padding=[(PAD, PAD), (PAD, PAD)],
        dimension_numbers=("NCHW", "OIHW", "NCHW"),
    )
    return jax.nn.sigmoid(out + bias.reshape(1, -1, 1, 1))


if __name__ == "__main__":
    key = jax.random.PRNGKey(0)
    k1, k2, k3 = jax.random.split(key, 3)

    B, C, H, W = 2, 4, 16, 16
    x = jax.random.normal(k1, (B, C, H, W), dtype=jnp.float32)
    # Deterministic synthetic parameters (Conv2d(2, 1, 7, padding=3)).
    weight = jax.random.normal(k2, (1, 2, KS, KS), dtype=jnp.float32) * 0.1
    bias = jax.random.normal(k3, (1,), dtype=jnp.float32) * 0.1

    out = spatial_attention(x, weight, bias)
    jax.block_until_ready(out)

    ref = reference(x.astype(jnp.float32), weight, bias)
    assert out.shape == (B, 1, H, W), out.shape
    assert jnp.allclose(out, ref, atol=1e-5, rtol=1e-5), float(
        jnp.max(jnp.abs(out - ref))
    )
    print("KERNEL_OK")
</pallas_src>

<mosaic_0001>
module attributes {stable_mosaic.version = 11 : i64} {
  func.func @reduce_kernel(%arg0: i32, %arg1: i32, %arg2: memref<1x4x256xf32, #tpu.memory_space<vmem>>, %arg3: memref<1x2x256xf32, #tpu.memory_space<vmem>>) attributes {dimension_semantics = [#tpu.dimension_semantics<parallel>, #tpu.dimension_semantics<arbitrary>], iteration_bounds = array<i64: 2, 1>, scalar_prefetch = 0 : i64, scratch_operands = 0 : i64, tpu.core_type = #tpu.core_type<tc>, window_params = [{transform_indices = @transform_0, window_bounds = array<i64: 1, 4, 256>}, {transform_indices = @transform_1, window_bounds = array<i64: 1, 2, 256>}]} {
    %c0 = arith.constant 0 : index
    %c0_0 = arith.constant 0 : index
    %c0_1 = arith.constant 0 : index
    %0 = vector.load %arg2[%c0, %c0_0, %c0_1] : memref<1x4x256xf32, #tpu.memory_space<vmem>>, vector<1x4x256xf32>
    %1 = vector.shape_cast %0 : vector<1x4x256xf32> to vector<4x256xf32>
    %cst = arith.constant dense<0xFF800000> : vector<256xf32>
    %2 = vector.multi_reduction <maximumf>, %1, %cst [0] : vector<4x256xf32> to vector<256xf32>
    %cst_2 = arith.constant dense<0.000000e+00> : vector<256xf32>
    %3 = vector.multi_reduction <add>, %1, %cst_2 [0] : vector<4x256xf32> to vector<256xf32>
    %c0_i32 = arith.constant 0 : i32
    %4 = arith.cmpi eq, %arg1, %c0_i32 : i32
    %5 = arith.extui %4 : i1 to i32
    %c0_i32_3 = arith.constant 0 : i32
    %6 = arith.cmpi ne, %5, %c0_i32_3 : i32
    scf.if %6 {
      %cst_15 = arith.constant 0xFF800000 : f32
      %19 = vector.broadcast %cst_15 : f32 to vector<256xf32>
      %c0_16 = arith.constant 0 : index
      %c0_17 = arith.constant 0 : index
      %c0_18 = arith.constant 0 : index
      %20 = vector.load %arg3[%c0_16, %c0_17, %c0_18] : memref<1x2x256xf32, #tpu.memory_space<vmem>>, vector<1x1x256xf32>
      %21 = vector.shape_cast %20 : vector<1x1x256xf32> to vector<256xf32>
      %22 = vector.shape_cast %19 : vector<256xf32> to vector<1x1x256xf32>
      tpu.vector_store %arg3[%c0_16, %c0_17, %c0_18], %22 {strides = array<i32>} : memref<1x2x256xf32, #tpu.memory_space<vmem>>, vector<1x1x256xf32>,
      %cst_19 = arith.constant 0.000000e+00 : f32
      %23 = vector.broadcast %cst_19 : f32 to vector<256xf32>
      %c0_20 = arith.constant 0 : index
      %c1_21 = arith.constant 1 : index
      %c0_22 = arith.constant 0 : index
      %24 = vector.load %arg3[%c0_20, %c1_21, %c0_22] : memref<1x2x256xf32, #tpu.memory_space<vmem>>, vector<1x1x256xf32>
      %25 = vector.shape_cast %24 : vector<1x1x256xf32> to vector<256xf32>
      %26 = vector.shape_cast %23 : vector<256xf32> to vector<1x1x256xf32>
      tpu.vector_store %arg3[%c0_20, %c1_21, %c0_22], %26 {strides = array<i32>} : memref<1x2x256xf32, #tpu.memory_space<vmem>>, vector<1x1x256xf32>,
    } else {
    }
    %c0_4 = arith.constant 0 : index
    %c0_5 = arith.constant 0 : index
    %c0_6 = arith.constant 0 : index
    %7 = vector.load %arg3[%c0_4, %c0_5, %c0_6] : memref<1x2x256xf32, #tpu.memory_space<vmem>>, vector<1x1x256xf32>
    %8 = vector.shape_cast %7 : vector<1x1x256xf32> to vector<256xf32>
    %9 = arith.maximumf %8, %2 : vector<256xf32>
    %c0_7 = arith.constant 0 : index
    %c0_8 = arith.constant 0 : index
    %c0_9 = arith.constant 0 : index
    %10 = vector.load %arg3[%c0_7, %c0_8, %c0_9] : memref<1x2x256xf32, #tpu.memory_space<vmem>>, vector<1x1x256xf32>
    %11 = vector.shape_cast %10 : vector<1x1x256xf32> to vector<256xf32>
    %12 = vector.shape_cast %9 : vector<256xf32> to vector<1x1x256xf32>
    tpu.vector_store %arg3[%c0_7, %c0_8, %c0_9], %12 {strides = array<i32>} : memref<1x2x256xf32, #tpu.memory_space<vmem>>, vector<1x1x256xf32>,
    %c0_10 = arith.constant 0 : index
    %c1 = arith.constant 1 : index
    %c0_11 = arith.constant 0 : index
    %13 = vector.load %arg3[%c0_10, %c1, %c0_11] : memref<1x2x256xf32, #tpu.memory_space<vmem>>, vector<1x1x256xf32>
    %14 = vector.shape_cast %13 : vector<1x1x256xf32> to vector<256xf32>
    %15 = arith.addf %14, %3 : vector<256xf32>
    %c0_12 = arith.constant 0 : index
    %c1_13 = arith.constant 1 : index
    %c0_14 = arith.constant 0 : index
    %16 = vector.load %arg3[%c0_12, %c1_13, %c0_14] : memref<1x2x256xf32, #tpu.memory_space<vmem>>, vector<1x1x256xf32>
    %17 = vector.shape_cast %16 : vector<1x1x256xf32> to vector<256xf32>
    %18 = vector.shape_cast %15 : vector<256xf32> to vector<1x1x256xf32>
    tpu.vector_store %arg3[%c0_12, %c1_13, %c0_14], %18 {strides = array<i32>} : memref<1x2x256xf32, #tpu.memory_space<vmem>>, vector<1x1x256xf32>,
    return
  }
  func.func @transform_0(%arg0: i32, %arg1: i32) -> (i32, i32, i32) {
    %c0_i32 = arith.constant 0 : i32
    %c0_i32_0 = arith.constant 0 : i32
    return %arg0, %arg1, %c0_i32 : i32, i32, i32
  }
  func.func @transform_1(%arg0: i32, %arg1: i32) -> (i32, i32, i32) {
    %c0_i32 = arith.constant 0 : i32
    %c0_i32_0 = arith.constant 0 : i32
    %c0_i32_1 = arith.constant 0 : i32
    return %arg0, %c0_i32, %c0_i32_0 : i32, i32, i32
  }
}

</mosaic_0001>

<bundles_post_ra>
// kernel: tpu_custom_call.1
= control target key start
LH: loop header
LB: loop body
LE: loop exit
PB: predicated region body
PF: predicated region fallthrough
CT: control target
= control target key end

     0   :  { %6 = vsyncpa [#allocation3], 0  ;;  %s745_s0 = inlined_call_operand.hbm [shape: f32[2,4,256], index: 0, kind: input, shape index: {}]   ;;  %s746_s1 = inlined_call_operand.hbm [shape: f32[2,2,256], index: 1, kind: output, shape index: {}]  }
   0x1   :  { %8 = vsyncpa [#allocation3 + $0x1], 0 }
   0x2   :  { %9 = vsyncpa [#allocation4], 0 }
   0x3   :  { %11 = vsyncpa [#allocation4 + $0x1], 0  ;;  %s551_s6 = smov 0   ;;  %s553_s7 = smov 0  }
   0x4   :  { %s555_s8 = smov 0   ;;  %s557_s9 = smov 0  }
   0x5   :  { %s559_s10 = smov 0   ;;  %s561_s11 = smov 0  }
   0x6 LB: > { %s336_s12 = sadd.s32 4294967295, %s534_s11   ;;  %s337_s13 = sadd.s32 4294967294, %s534_s11   ;;  %s534_s11 = sphi %s561_s11, %s17_s11   ;;  %s530_s10 = sphi %s559_s10, %s764_s10   ;;  %s526_s9 = sphi %s557_s9, %s763_s9   ;;  %s522_s8 = sphi %s555_s8, %s762_s8   ;;  %s518_s7 = sphi %s553_s7, %s761_s7   ;;  %s514_s6 = sphi %s551_s6, %s760_s6  }
   0x7   : > { %s29_s14 = sadd.s32 1, %s530_s10  ;;  %s38_s15 = sadd.s32 1, %s522_s8 }
   0x8   : > { %p31_p0 = scmp.ge.s32.totalorder %s29_s14, 2  ;;  %p45_p1 = scmp.ne.s32.totalorder %s522_s8, %s518_s7 }
   0x9   : > { %p46_p2 = scmp.eq.s32.totalorder %s534_s11, 0  ;;  %p51_p3 = scmp.ne.s32.totalorder %s518_s7, %s514_s6 }
   0xa   : > { %s766_s14 = smov (%p31_p0, %s29_s14), 0  ;;  %p52_p5 = scmp.eq.s32.totalorder %s336_s12, 0 }
   0xb   : > { %p592_p4 = por %p46_p2, %p45_p1  ;;  %s33_s17 = ssub.s32 %s530_s10, %s766_s14 }
   0xc   : > { %p75_p6 = scmp.eq.s32.totalorder %s336_s12, 1  ;;  %p36_p7 = scmp.eq.s32.totalorder %s33_s17, 0 }
   0xd   : > { %p598_p8 = por %p52_p5, %p51_p3  ;;  %p81_p10 = scmp.eq.s32.totalorder %s337_s13, 1 }
   0xe   : > { %p602_p9 = por %p75_p6, %p45_p1  ;;  %p368_p13 = scmp.lt.s32.totalorder %s534_s11, 2 }
   0xf   : > { %s607_s20 = scalar_select %p36_p7, %s522_s8, %s38_s15  }
  0x10   : > { %s750_s19 = scalar_select %p602_p9, 1, 0 }
  0x11   : > { %p609_p11 = por %p81_p10, %p51_p3  ;;  %s101_s22 = sand.u32 1, %s522_s8  }
  0x12   : > { %s340_s23 = sshll.u32 %s101_s22, 3  ;;  %s354_s24 = sshll.u32 %s530_s10, 7 }
  0x13   : > { %s751_s21 = scalar_select %p609_p11, 1, 0 }
  0x14   : > { %s620_s27 = scalar_lea.hbm %s745_s0, %s354_s24  ;;  %s105_s28 = scalar_lea.vmem [#allocation2], %s340_s23 }
  0x15   : > { %s115_s29 = sshll.u32 %s105_s28, 4  ;;  %p626_p0 = pnand %p368_p13, %p592_p4  ;;  %s622_s29 = int_to_ptr.vmem [resolvable:$true] %s115_s29 }
  0x16   : > { %s102_s2 = scalar_lea.sflag [#allocation3], %s101_s22  ;;  %s422_s3 = scalar_lea.hbm %s620_s27, 128 }
  0x17   : > { %p423_p3 = scmp.ne.s32.totalorder %s620_s27, %s422_s3  ;;  %p424_p5 = pneg %p626_p0 }
  0x18   : > { %s427_s12 = scalar_lea.hbm %s745_s0, 256  ;;  %p428_p4 = scmp.lt.u32.totalorder %s620_s27, %s745_s0 }
  0x19   : > { %p425_p6 = pnand %p424_p5, %p423_p3  ;;  %p429_p10 = scmp.lt.u32.totalorder %s427_s12, %s422_s3 }
  0x1a   : > { %p431_p12 = scmp.lt.u32.totalorder %s422_s3, %s620_s27 }
  0x1b   : > { %p426_p7 = pneg %p425_p6  ;;  %p430_p13 = por %p429_p10, %p428_p4 }
  0x1d   : > { %p432_p1 = por %p431_p12, %p430_p13 }
  0x1f   : > { %p433_p2 = pnand %p432_p1, %p426_p7 }
  0x21   : > { %436 = shalt.err (!%p433_p2)
}
  0x22   : > { %s437_s16 = scalar_lea.vmem %s622_s29, 128  ;;  %s536_s17 = smov [#allocation2]  }
  0x23   : > { %p438_p3 = scmp.ne.s32.totalorder %s622_s29, %s437_s16  ;;  %s442_s22 = sshll.u32 %s536_s17, 4  ;;  %s443_s22 = int_to_ptr.vmem [resolvable:$false] %s442_s22 }
  0x24   : > { %s444_s23 = scalar_lea.vmem %s443_s22, 256  ;;  %p445_p9 = scmp.lt.s32.totalorder %s622_s29, %s443_s22 }
  0x25   : > { %p440_p6 = pnand %p438_p3, %p424_p5  ;;  %p446_p4 = scmp.lt.s32.totalorder %s444_s23, %s437_s16 }
  0x27   : > { %p441_p11 = pneg %p440_p6  ;;  %p447_p10 = por %p446_p4, %p445_p9 }
  0x29   : > { %p448_p12 = pnand %p447_p10, %p441_p11 }
  0x2b   : > { %451 = shalt.err (!%p448_p12)
}
  0x2c   : > { %363 = dma.hbm_to_vmem [thread:$0]  (!%p626_p0), %s620_s27, 128, %s622_s29, %s102_s2  }
  0x2d   : > { %p753_p1 = scmp.lt.s32.totalorder %s534_s11, 3  ;;  %p754_p2 = scmp.ge.s32.totalorder %s534_s11, 1 }
  0x2f   : > { %p121_p5 = pnand %p754_p2, %p753_p1 }
  0x30   : > { %s662_s24 = sand.u32 (!%p121_p5), 1, %s518_s7  }
  0x31   : > { %124 = sbr.rel (%p121_p5) target bundleno = 96 (0x60), region = 24  ;;  %s344_s25 = sshll.u32 (!%p121_p5), %s662_s24, 3 }
  0x32   : > { %s127_s26 = scalar_lea.sflag (!%p121_p5), [#allocation3], %s662_s24  ;;  %s130_s28 = scalar_lea.vmem (!%p121_p5), [#allocation2], %s344_s25 }
  0x38   : > { %505 = dma.done.wait (%p598_p8), %s127_s26, 128  }
  0x39   : > { %507 = vsyncadd (%p598_p8), %s127_s26, 4294967168  ;;  %s345_s27 = sshll.u32 %s662_s24, 2  ;;  %v186_v0 = vlaneseq  ;;  %v537_v2 = vmov -inf   ;;  %v538_v3 = vmov 0.0   ;;  %vm153_vm1 = vcmask 1043456   ;;  %v149_v4 = vld [vmem:[%s130_s28] sm:$0xff] }
  0x3a   : > { %s675_s29 = scalar_lea.vmem [#allocation5], %s345_s27  ;;  %v151_v5 = vcombine.high %v149_v4, %v149_v4  ;;  %v154_v6 = vsel %vm153_vm1, %v149_v4, -inf  ;;  %v168_v7 = vsel %vm153_vm1, %v149_v4, 0.0  ;;  %v539_v16 = vmov 1966171168   ;;  %s355_s18 = sshll.u32 %s526_s9, 6 }
  0x3b   : > { %vm671_vm0 = vcmp.lt.s32.totalorder %v186_v0, 256  ;;  %v155_v8 = vrot.slane %v154_v6, 4  ;;  %v169_v9 = vrot.slane %v168_v7, 4  ;;  %v198_v17 = vunpack.c.l.s4 %v539_v16  ;;  %s255_s30 = sshll.u32 %s675_s29, 4  ;;  %s690_s4 = scalar_lea.hbm %s746_s1, %s355_s18  ;;  %s692_s30 = int_to_ptr.vmem [resolvable:$true] %s255_s30 }
  0x3c   : > { %190 = vst.msk [vmem:[%s675_s29] ss:$2 sm:$0x3] %vm671_vm0, %v537_v2  ;;  %346 = vst.msk [vmem:[%s675_s29 + $0x1] ss:$2 sm:$0x3] %vm671_vm0, %v538_v3 }
  0x3d   : > { %v161_v10 = vsel %vm153_vm1, %v151_v5, -inf  ;;  %v175_v11 = vsel %vm153_vm1, %v151_v5, 0.0  ;;  %v156_v12 = vmax.f32 %v154_v6, %v155_v8  ;;  %v170_v14 = vadd.f32 %v169_v9, %v168_v7  ;;  %s241_s9 = scalar_lea.sflag [#allocation4], %s662_s24  ;;  %s452_s5 = scalar_lea.vmem %s692_s30, 64 }
  0x3e   : > { %v162_v13 = vrot.slane %v161_v10, 4  ;;  %v176_v15 = vrot.slane %v175_v11, 4  ;;  %v199_v26 = vunpack.c.0.s8 %v198_v17  ;;  %v201_v27 = vshrl.u32 %v186_v0, 7  ;;  %p453_p8 = scmp.ne.s32.totalorder %s692_s30, %s452_s5  ;;  %p757_p9 = scmp.ne.s32.totalorder %s750_s19, 0 }
  0x3f   : > { %v157_v18 = vrot.slane %v156_v12, 2  ;;  %v171_v20 = vrot.slane %v170_v14, 2  ;;  %s540_s12 = smov [#allocation5]  }
  0x40   : > { %v163_v19 = vmax.f32 %v161_v10, %v162_v13  ;;  %v177_v21 = vadd.f32 %v176_v15, %v175_v11  ;;  %v202_v36 = vsub.s32 %v199_v26, %v201_v27  ;;  %p454_p11 = pnand %p453_p8, %p757_p9  ;;  %s456_s13 = sshll.u32 %s540_s12, 4  ;;  %s457_s13 = int_to_ptr.vmem [resolvable:$false] %s456_s13 }
  0x41   : > { %v158_v22 = vmax.f32 %v156_v12, %v157_v18  ;;  %v172_v24 = vadd.f32 %v171_v20, %v170_v14  ;;  %s458_s15 = scalar_lea.vmem %s457_s13, 128  ;;  %p459_p7 = scmp.lt.s32.totalorder %s692_s30, %s457_s13 }
  0x42   : > { %v164_v23 = vrot.slane %v163_v19, 2  ;;  %v178_v25 = vrot.slane %v177_v21, 2  ;;  %p455_p0 = pneg %p454_p11  ;;  %p460_p13 = scmp.lt.s32.totalorder %s458_s15, %s452_s5 }
  0x43   : > { %v159_v28 = vrot.slane %v158_v22, 1  ;;  %v173_v30 = vrot.slane %v172_v24, 1  ;;  %v193_v43 = vld [vmem:[%s675_s29] ss:$2 sm:$0x3] }
  0x44   : > { %v165_v29 = vmax.f32 %v163_v19, %v164_v23  ;;  %v179_v31 = vadd.f32 %v178_v25, %v177_v21  ;;  %v347_v44 = vld [vmem:[%s675_s29 + $0x1] ss:$2 sm:$0x3]  ;;  %p461_p3 = por %p460_p13, %p459_p7 }
  0x45   : > { %v160_v32 = vmax.f32 %v158_v22, %v159_v28  ;;  %v174_v34 = vadd.f32 %v173_v30, %v172_v24 }
  0x46   : > { %v166_v33 = vrot.slane %v165_v29, 1  ;;  %v180_v35 = vrot.slane %v179_v31, 1  ;;  %p462_p6 = pnand %p461_p3, %p455_p0 }
  0x48   : > { %v167_v37 = vmax.f32 %v165_v29, %v166_v33  ;;  %v181_v38 = vadd.f32 %v180_v35, %v179_v31 }
  0x4a   : > { %v196_v39 = vcombine.low %v160_v32, %v167_v37  ;;  %v222_v40 = vcombine.low %v174_v34, %v181_v38 }
  0x4c   : > { %v203_v41 = vrot.slane %v196_v39, %v202_v36  ;;  %v229_v42 = vrot.slane %v222_v40, %v202_v36 }
  0x4e   : > { %v210_v45 = vrot.slane %v203_v41, %v202_v36  ;;  %v236_v46 = vrot.slane %v229_v42, %v202_v36 }
  0x50   : > { %v212_v47 = vmax.f32 %v193_v43, %v210_v45  ;;  %v238_v48 = vadd.f32 %v347_v44, %v236_v46 }
  0x52   : > { %217 = vst.msk [vmem:[%s675_s29] ss:$2 sm:$0x3] %vm671_vm0, %v212_v47  ;;  %348 = vst.msk [vmem:[%s675_s29 + $0x1] ss:$2 sm:$0x3] %vm671_vm0, %v238_v48 }
  0x53   : > { %465 = shalt.err (!%p462_p6)
}
  0x54   : > { %s466_s16 = scalar_lea.hbm %s690_s4, 64  ;;  %s470_s23 = scalar_lea.hbm %s746_s1, 128 }
  0x55   : > { %p467_p4 = scmp.ne.s32.totalorder %s690_s4, %s466_s16  ;;  %p471_p1 = scmp.lt.u32.totalorder %s690_s4, %s746_s1 }
  0x56   : > { %p472_p2 = scmp.lt.u32.totalorder %s470_s23, %s466_s16  ;;  %p474_p8 = scmp.lt.u32.totalorder %s466_s16, %s690_s4 }
  0x57   : > { %p468_p10 = pnand %p467_p4, %p757_p9 }
  0x58   : > { %p473_p5 = por %p472_p2, %p471_p1 }
  0x59   : > { %p469_p12 = pneg %p468_p10 }
  0x5a   : > { %p475_p11 = por %p474_p8, %p473_p5 }
  0x5c   : > { %p476_p0 = pnand %p475_p11, %p469_p12 }
  0x5e   : > { %479 = shalt.err (!%p476_p0)
}
  0x5f   : > { %358 = dma.vmem_to_hbm [thread:$0]  (%p757_p9), %s692_s30, 64, %s690_s4, %s241_s9  }
  0x60 PF: > { %s267_s26 = sand.u32 1, %s514_s6   ;;  %p758_p7 = scmp.ne.s32.totalorder %s751_s21, 0 }
  0x61   : > { %p759_p13 = scmp.ge.s32.totalorder %s534_s11, 2  ;;  %s268_s28 = scalar_lea.sflag [#allocation4], %s267_s26 }
  0x63   : > { %p365_p3 = pnand %p759_p13, %p758_p7 }
  0x65   : > { %509 = dma.done.wait (!%p365_p3), %s268_s28, 64  }
  0x66   : > { %511 = vsyncadd (!%p365_p3), %s268_s28, 4294967232  ;;  %s17_s11 = sadd.s32 1, %s534_s11   ;;  %s760_s6 = smov %s518_s7 }
  0x67   : > { %p14_p6 = scmp.ge.s32.totalorder %s17_s11, 4   ;;  %s761_s7 = smov %s522_s8 }
  0x68   : > { %s762_s8 = smov %s607_s20  ;;  %s763_s9 = smov %s530_s10 }
  0x69   : > { %s764_s10 = smov %s766_s14  ;;  %16 = sbr.rel (!%p14_p6) target bundleno = 6 (0x6), region = 75 }
  0x70   :  { %273 = vsyncpa [#allocation3], 1 }
  0x71   :  { %275 = vsyncpa [#allocation3 + $0x1], 1 }
  0x72   :  { %276 = vsyncpa [#allocation4], 1 }
  0x73   :  { %278 = vsyncpa [#allocation4 + $0x1], 1 }

</bundles_post_ra>
